<compile_context>
chip_gen: v7x
topology: tpu7x:2x2x1
jax: 0.10.0
libtpu: 0.0.40
codegen_flags: <defaults>
</compile_context>

<pallas_src>
import functools

import jax
import jax.numpy as jnp
from jax import lax
from jax.experimental import pallas as pl
from jax.experimental.pallas import tpu as pltpu

BN_EPS = 1e-5
LANES = 128
SUBLANES = 8


def _round_up(n, m):
    return ((n + m - 1) // m) * m


def _mlp_kernel(x_ref,
                w0_ref, b0_ref,
                w1_ref, b1_ref,
                w23_ref, b23_ref,
                w4_ref, b4_ref,
                out_ref):
    x = x_ref[...]

    # block 0: Linear(+folded BN0) + ReLU   (dropout = identity in eval)
    h = jnp.dot(x, w0_ref[...], preferred_element_type=jnp.float32) + b0_ref[...]
    h = jnp.maximum(h, 0.0)

    # block 1: Linear(+folded BN1) + ReLU   (dropout = identity in eval)
    h = jnp.dot(h, w1_ref[...], preferred_element_type=jnp.float32) + b1_ref[...]
    h = jnp.maximum(h, 0.0)

    # feature_extractor_2 + classifier_0 fused offline (no nonlinearity in
    # between), followed by the classifier ReLU.
    h = jnp.dot(h, w23_ref[...], preferred_element_type=jnp.float32) + b23_ref[...]
    h = jnp.maximum(h, 0.0)

    # classifier_1 + softmax.  Padded logit lanes carry a -1e30 bias -> exp()==0,
    # so max/sum only see the real classes.
    logits = jnp.dot(h, w4_ref[...], preferred_element_type=jnp.float32) + b4_ref[...]
    mx = jnp.max(logits, axis=-1, keepdims=True)
    e = jnp.exp(logits - mx)
    denom = jnp.sum(e, axis=-1, keepdims=True)
    out_ref[...] = e * pl.reciprocal(denom, approx=True)


def _pad2(a, rows, cols):
    return jnp.pad(a, ((0, rows - a.shape[0]), (0, cols - a.shape[1])))


def _prepare_params(params, num_classes):
    """Fold BN, fuse W2@W3, zero-pad everything to lane-dense slabs."""
    (w0, b0, g0, be0, m0, v0,
     w1, b1, g1, be1, m1, v1,
     w2, b2, w3, b3, w4, b4) = params

    # Fold eval-mode BatchNorm into the preceding Linear (exact in eval mode).
    s0 = g0 * lax.rsqrt(v0 + BN_EPS)          # (1, 64)
    w0f = w0 * s0
    b0f = (b0 - m0) * s0 + be0
    s1 = g1 * lax.rsqrt(v1 + BN_EPS)
    w1f = w1 * s1
    b1f = (b1 - m1) * s1 + be1

    # Fuse Linear(64, 32) -> Linear(32, 16): no nonlinearity between them.
    w23 = w2 @ w3                              # (64, 16)
    b23 = b2 @ w3 + b3                         # (1, 16)

    in_dim = w0.shape[0]
    # Input feature dim only needs sublane alignment (block = full array dim).
    in_p = _round_up(in_dim, SUBLANES)

    w0p = _pad2(w0f, in_p, LANES)
    b0p = _pad2(b0f, 1, LANES)
    w1p = _pad2(w1f, LANES, LANES)
    b1p = _pad2(b1f, 1, LANES)
    w23p = _pad2(w23, LANES, LANES)
    b23p = _pad2(b23, 1, LANES)
    w4p = _pad2(w4, LANES, LANES)
    # Padded logit lanes must not contaminate the softmax -> huge negative bias.
    b4p = jnp.full((1, LANES), -1e30, jnp.float32).at[:, :num_classes].set(b4[0])

    return (w0p, b0p, w1p, b1p, w23p, b23p, w4p, b4p), in_p


@functools.partial(jax.jit, static_argnames=("num_classes",))
def disaster_risk_forward(x, params, num_classes):
    """Full MLP forward pass in a single batch-gridded Pallas kernel."""
    B, in_dim = x.shape
    prep, in_p = _prepare_params(params, num_classes)

    # Batch tile: large enough to amortize the ~0.35 us/step grid overhead,
    # small enough (1024*128*4 B per f32 slab, double-buffered) to stay far
    # under every chip's scoped VMEM limit.
    TB = min(1024, _round_up(B, SUBLANES))
    Bp = _round_up(B, TB)
    xp = jnp.pad(x.astype(jnp.float32), ((0, Bp - B), (0, in_p - in_dim)))

    x_spec = pl.BlockSpec((TB, in_p), lambda i: (i, 0))
    # Constant index maps -> weights stay VMEM-resident across grid steps.
    w_specs = [pl.BlockSpec(p.shape, lambda i: (0, 0)) for p in prep]
    out_spec = pl.BlockSpec((TB, LANES), lambda i: (i, 0))

    out = pl.pallas_call(
        _mlp_kernel,
        out_shape=jax.ShapeDtypeStruct((Bp, LANES), jnp.float32),
        grid=(Bp // TB,),
        in_specs=[x_spec] + w_specs,
        out_specs=out_spec,
        compiler_params=pltpu.CompilerParams(
            dimension_semantics=("parallel",)),
    )(xp, *prep)

    return out[:B, :num_classes]


def init_params(key, input_dim, num_classes):
    """Deterministic synthetic parameter init (not a checkpoint load)."""
    ks = jax.random.split(key, 10)

    def lin(kw, kb, fan_in, fan_out):
        scale = 1.0 / jnp.sqrt(jnp.float32(fan_in))
        w = jax.random.uniform(kw, (fan_in, fan_out), jnp.float32, -scale, scale)
        b = jax.random.uniform(kb, (1, fan_out), jnp.float32, -scale, scale)
        return w, b

    w0, b0 = lin(ks[0], ks[1], input_dim, 64)
    w1, b1 = lin(ks[2], ks[3], 64, 64)
    w2, b2 = lin(ks[4], ks[5], 64, 32)
    w3, b3 = lin(ks[6], ks[7], 32, 16)
    w4, b4 = lin(ks[8], ks[9], 16, num_classes)

    # BatchNorm1d(64): gamma=1, beta=0, running_mean=0, running_var=1 (as at init)
    g0 = jnp.ones((1, 64), jnp.float32)
    be0 = jnp.zeros((1, 64), jnp.float32)
    m0 = jnp.zeros((1, 64), jnp.float32)
    v0 = jnp.ones((1, 64), jnp.float32)
    g1 = jnp.ones((1, 64), jnp.float32)
    be1 = jnp.zeros((1, 64), jnp.float32)
    m1 = jnp.zeros((1, 64), jnp.float32)
    v1 = jnp.ones((1, 64), jnp.float32)

    return (w0, b0, g0, be0, m0, v0,
            w1, b1, g1, be1, m1, v1,
            w2, b2,
            w3, b3,
            w4, b4)


def reference_forward(x, params):
    """Pure-JAX reference for correctness check (unfolded, unfused)."""
    (w0, b0, g0, be0, m0, v0,
     w1, b1, g1, be1, m1, v1,
     w2, b2, w3, b3, w4, b4) = params
    h = x @ w0 + b0
    h = (h - m0) / jnp.sqrt(v0 + BN_EPS) * g0 + be0
    h = jnp.maximum(h, 0.0)
    h = h @ w1 + b1
    h = (h - m1) / jnp.sqrt(v1 + BN_EPS) * g1 + be1
    h = jnp.maximum(h, 0.0)
    h = h @ w2 + b2
    h = jnp.maximum(h @ w3 + b3, 0.0)
    logits = h @ w4 + b4
    return jax.nn.softmax(logits, axis=1)


if __name__ == "__main__":
    B, INPUT_DIM, NUM_CLASSES = 8, 16, 4

    key = jax.random.PRNGKey(0)
    k_x, k_p = jax.random.split(key)
    x = jax.random.normal(k_x, (B, INPUT_DIM), jnp.float32)
    params = init_params(k_p, INPUT_DIM, NUM_CLASSES)

    out = disaster_risk_forward(x, params, NUM_CLASSES)
    out = jax.block_until_ready(out)

    ref = reference_forward(x, params)
    assert out.shape == (B, NUM_CLASSES)
    # approx reciprocal + BN/W2W3 folding introduce ~1e-4-level drift.
    assert jnp.allclose(jnp.sum(out, axis=1), 1.0, atol=2e-3)
    assert jnp.allclose(out, ref, atol=2e-3, rtol=2e-3)

    print("KERNEL_OK")
</pallas_src>

<mosaic_0001>
module attributes {stable_mosaic.version = 11 : i64} {
  func.func @_mlp_kernel(%arg0: i32, %arg1: memref<8x16xf32, #tpu.memory_space<vmem>>, %arg2: memref<16x128xf32, #tpu.memory_space<vmem>>, %arg3: memref<1x128xf32, #tpu.memory_space<vmem>>, %arg4: memref<128x128xf32, #tpu.memory_space<vmem>>, %arg5: memref<1x128xf32, #tpu.memory_space<vmem>>, %arg6: memref<128x128xf32, #tpu.memory_space<vmem>>, %arg7: memref<1x128xf32, #tpu.memory_space<vmem>>, %arg8: memref<128x128xf32, #tpu.memory_space<vmem>>, %arg9: memref<1x128xf32, #tpu.memory_space<vmem>>, %arg10: memref<8x128xf32, #tpu.memory_space<vmem>>) attributes {dimension_semantics = [#tpu.dimension_semantics<parallel>], iteration_bounds = array<i64: 1>, scalar_prefetch = 0 : i64, scratch_operands = 0 : i64, tpu.core_type = #tpu.core_type<tc>, window_params = [{transform_indices = @transform_0, window_bounds = array<i64: 8, 16>}, {pipeline_mode = #tpu.pipeline_mode<synchronous>, transform_indices = @transform_1, window_bounds = array<i64: 16, 128>}, {pipeline_mode = #tpu.pipeline_mode<synchronous>, transform_indices = @transform_2, window_bounds = array<i64: 1, 128>}, {pipeline_mode = #tpu.pipeline_mode<synchronous>, transform_indices = @transform_3, window_bounds = array<i64: 128, 128>}, {pipeline_mode = #tpu.pipeline_mode<synchronous>, transform_indices = @transform_4, window_bounds = array<i64: 1, 128>}, {pipeline_mode = #tpu.pipeline_mode<synchronous>, transform_indices = @transform_5, window_bounds = array<i64: 128, 128>}, {pipeline_mode = #tpu.pipeline_mode<synchronous>, transform_indices = @transform_6, window_bounds = array<i64: 1, 128>}, {pipeline_mode = #tpu.pipeline_mode<synchronous>, transform_indices = @transform_7, window_bounds = array<i64: 128, 128>}, {pipeline_mode = #tpu.pipeline_mode<synchronous>, transform_indices = @transform_8, window_bounds = array<i64: 1, 128>}, {transform_indices = @transform_9, window_bounds = array<i64: 8, 128>}]} {
    %c0 = arith.constant 0 : index
    %c0_0 = arith.constant 0 : index
    %0 = vector.load %arg1[%c0, %c0_0] : memref<8x16xf32, #tpu.memory_space<vmem>>, vector<8x16xf32>
    %c0_1 = arith.constant 0 : index
    %c0_2 = arith.constant 0 : index
    %1 = vector.load %arg2[%c0_1, %c0_2] : memref<16x128xf32, #tpu.memory_space<vmem>>, vector<16x128xf32>
    %cst = arith.constant dense<0.000000e+00> : vector<8x128xf32>
    %2 = tpu.matmul %0, %1, %cst {dimension_numbers = #tpu.dot_dimension_numbers<[1], [0], [0], [1], [0, 0, 1, 1], [], []>} : vector<8x16xf32>, vector<16x128xf32>, vector<8x128xf32> -> vector<8x128xf32>
    %c0_3 = arith.constant 0 : index
    %c0_4 = arith.constant 0 : index
    %3 = vector.load %arg3[%c0_3, %c0_4] : memref<1x128xf32, #tpu.memory_space<vmem>>, vector<1x128xf32>
    %4 = vector.broadcast %3 : vector<1x128xf32> to vector<8x128xf32>
    %5 = arith.addf %2, %4 : vector<8x128xf32>
    %cst_5 = arith.constant 0.000000e+00 : f32
    %6 = vector.broadcast %cst_5 : f32 to vector<8x128xf32>
    %7 = arith.maximumf %5, %6 : vector<8x128xf32>
    %c0_6 = arith.constant 0 : index
    %c0_7 = arith.constant 0 : index
    %8 = vector.load %arg4[%c0_6, %c0_7] : memref<128x128xf32, #tpu.memory_space<vmem>>, vector<128x128xf32>
    %cst_8 = arith.constant dense<0.000000e+00> : vector<8x128xf32>
    %9 = tpu.matmul %7, %8, %cst_8 {dimension_numbers = #tpu.dot_dimension_numbers<[1], [0], [0], [1], [0, 0, 1, 1], [], []>} : vector<8x128xf32>, vector<128x128xf32>, vector<8x128xf32> -> vector<8x128xf32>
    %c0_9 = arith.constant 0 : index
    %c0_10 = arith.constant 0 : index
    %10 = vector.load %arg5[%c0_9, %c0_10] : memref<1x128xf32, #tpu.memory_space<vmem>>, vector<1x128xf32>
    %11 = vector.broadcast %10 : vector<1x128xf32> to vector<8x128xf32>
    %12 = arith.addf %9, %11 : vector<8x128xf32>
    %cst_11 = arith.constant 0.000000e+00 : f32
    %13 = vector.broadcast %cst_11 : f32 to vector<8x128xf32>
    %14 = arith.maximumf %12, %13 : vector<8x128xf32>
    %c0_12 = arith.constant 0 : index
    %c0_13 = arith.constant 0 : index
    %15 = vector.load %arg6[%c0_12, %c0_13] : memref<128x128xf32, #tpu.memory_space<vmem>>, vector<128x128xf32>
    %cst_14 = arith.constant dense<0.000000e+00> : vector<8x128xf32>
    %16 = tpu.matmul %14, %15, %cst_14 {dimension_numbers = #tpu.dot_dimension_numbers<[1], [0], [0], [1], [0, 0, 1, 1], [], []>} : vector<8x128xf32>, vector<128x128xf32>, vector<8x128xf32> -> vector<8x128xf32>
    %c0_15 = arith.constant 0 : index
    %c0_16 = arith.constant 0 : index
    %17 = vector.load %arg7[%c0_15, %c0_16] : memref<1x128xf32, #tpu.memory_space<vmem>>, vector<1x128xf32>
    %18 = vector.broadcast %17 : vector<1x128xf32> to vector<8x128xf32>
    %19 = arith.addf %16, %18 : vector<8x128xf32>
    %cst_17 = arith.constant 0.000000e+00 : f32
    %20 = vector.broadcast %cst_17 : f32 to vector<8x128xf32>
    %21 = arith.maximumf %19, %20 : vector<8x128xf32>
    %c0_18 = arith.constant 0 : index
    %c0_19 = arith.constant 0 : index
    %22 = vector.load %arg8[%c0_18, %c0_19] : memref<128x128xf32, #tpu.memory_space<vmem>>, vector<128x128xf32>
    %cst_20 = arith.constant dense<0.000000e+00> : vector<8x128xf32>
    %23 = tpu.matmul %21, %22, %cst_20 {dimension_numbers = #tpu.dot_dimension_numbers<[1], [0], [0], [1], [0, 0, 1, 1], [], []>} : vector<8x128xf32>, vector<128x128xf32>, vector<8x128xf32> -> vector<8x128xf32>
    %c0_21 = arith.constant 0 : index
    %c0_22 = arith.constant 0 : index
    %24 = vector.load %arg9[%c0_21, %c0_22] : memref<1x128xf32, #tpu.memory_space<vmem>>, vector<1x128xf32>
    %25 = vector.broadcast %24 : vector<1x128xf32> to vector<8x128xf32>
    %26 = arith.addf %23, %25 : vector<8x128xf32>
    %cst_23 = arith.constant dense<0xFF800000> : vector<8xf32>
    %27 = vector.multi_reduction <maximumf>, %26, %cst_23 [1] : vector<8x128xf32> to vector<8xf32>
    %28 = vector.shape_cast %27 : vector<8xf32> to vector<8x1xf32>
    %29 = vector.broadcast %28 : vector<8x1xf32> to vector<8x128xf32>
    %30 = arith.subf %26, %29 : vector<8x128xf32>
    %31 = math.exp %30 : vector<8x128xf32>
    %cst_24 = arith.constant dense<0.000000e+00> : vector<8xf32>
    %32 = vector.multi_reduction <add>, %31, %cst_24 [1] : vector<8x128xf32> to vector<8xf32>
    %33 = vector.shape_cast %32 : vector<8xf32> to vector<8x1xf32>
    %34 = tpu.reciprocal %33 {approx = true} : vector<8x1xf32> -> vector<8x1xf32>
    %35 = vector.broadcast %34 : vector<8x1xf32> to vector<8x128xf32>
    %36 = arith.mulf %31, %35 : vector<8x128xf32>
    %c0_25 = arith.constant 0 : index
    %c0_26 = arith.constant 0 : index
    %37 = vector.load %arg10[%c0_25, %c0_26] : memref<8x128xf32, #tpu.memory_space<vmem>>, vector<8x128xf32>
    tpu.vector_store %arg10[%c0_25, %c0_26], %36 {strides = array<i32>} : memref<8x128xf32, #tpu.memory_space<vmem>>, vector<8x128xf32>,
    return
  }
  func.func @transform_0(%arg0: i32) -> (i32, i32) {
    %c0_i32 = arith.constant 0 : i32
    %c0_i32_0 = arith.constant 0 : i32
    return %arg0, %c0_i32 : i32, i32
  }
  func.func @transform_1(%arg0: i32) -> (i32, i32) {
    %c0_i32 = arith.constant 0 : i32
    %c0_i32_0 = arith.constant 0 : i32
    %c0_i32_1 = arith.constant 0 : i32
    return %c0_i32, %c0_i32_0 : i32, i32
  }
  func.func @transform_2(%arg0: i32) -> (i32, i32) {
    %c0_i32 = arith.constant 0 : i32
    %c0_i32_0 = arith.constant 0 : i32
    %c0_i32_1 = arith.constant 0 : i32
    return %c0_i32, %c0_i32_0 : i32, i32
  }
  func.func @transform_3(%arg0: i32) -> (i32, i32) {
    %c0_i32 = arith.constant 0 : i32
    %c0_i32_0 = arith.constant 0 : i32
    %c0_i32_1 = arith.constant 0 : i32
    return %c0_i32, %c0_i32_0 : i32, i32
  }
  func.func @transform_4(%arg0: i32) -> (i32, i32) {
    %c0_i32 = arith.constant 0 : i32
    %c0_i32_0 = arith.constant 0 : i32
    %c0_i32_1 = arith.constant 0 : i32
    return %c0_i32, %c0_i32_0 : i32, i32
  }
  func.func @transform_5(%arg0: i32) -> (i32, i32) {
    %c0_i32 = arith.constant 0 : i32
    %c0_i32_0 = arith.constant 0 : i32
    %c0_i32_1 = arith.constant 0 : i32
    return %c0_i32, %c0_i32_0 : i32, i32
  }
  func.func @transform_6(%arg0: i32) -> (i32, i32) {
    %c0_i32 = arith.constant 0 : i32
    %c0_i32_0 = arith.constant 0 : i32
    %c0_i32_1 = arith.constant 0 : i32
    return %c0_i32, %c0_i32_0 : i32, i32
  }
  func.func @transform_7(%arg0: i32) -> (i32, i32) {
    %c0_i32 = arith.constant 0 : i32
    %c0_i32_0 = arith.constant 0 : i32
    %c0_i32_1 = arith.constant 0 : i32
    return %c0_i32, %c0_i32_0 : i32, i32
  }
  func.func @transform_8(%arg0: i32) -> (i32, i32) {
    %c0_i32 = arith.constant 0 : i32
    %c0_i32_0 = arith.constant 0 : i32
    %c0_i32_1 = arith.constant 0 : i32
    return %c0_i32, %c0_i32_0 : i32, i32
  }
  func.func @transform_9(%arg0: i32) -> (i32, i32) {
    %c0_i32 = arith.constant 0 : i32
    %c0_i32_0 = arith.constant 0 : i32
    return %arg0, %c0_i32 : i32, i32
  }
}

</mosaic_0001>

<bundles_post_ra>
// kernel: disaster_risk_forward.1
= control target key start
LH: loop header
LB: loop body
LE: loop exit
PB: predicated region body
PF: predicated region fallthrough
CT: control target
= control target key end

     0   :  { %v665_v0 = vmov 0.0|0.0   ;;  %vm666_vm0 = vmmov 0   ;;  %v667_v3 = vmov 0.0   ;;  %vm42_vm1 = vcmask 130048   ;;  %s919_s1 = inlined_call_operand.vmem [shape: f32[16,128], index: 1, kind: input, shape index: {}]   ;;  %s920_s3 = inlined_call_operand.vmem [shape: f32[128,128], index: 3, kind: input, shape index: {}]   ;;  %s921_s0 = inlined_call_operand.vmem [shape: f32[8,16], index: 0, kind: input, shape index: {}]   ;;  %s922_s5 = inlined_call_operand.vmem [shape: f32[128,128], index: 5, kind: input, shape index: {}]   ;;  %s923_s2 = inlined_call_operand.vmem [shape: f32[1,128], index: 2, kind: input, shape index: {}]   ;;  %s924_s7 = inlined_call_operand.vmem [shape: f32[128,128], index: 7, kind: input, shape index: {}]   ;;  %s925_s4 = inlined_call_operand.vmem [shape: f32[1,128], index: 4, kind: input, shape index: {}]   ;;  %s926_s6 = inlined_call_operand.vmem [shape: f32[1,128], index: 6, kind: input, shape index: {}]   ;;  %s927_s8 = inlined_call_operand.vmem [shape: f32[1,128], index: 8, kind: input, shape index: {}]   ;;  %s928_s9 = inlined_call_operand.vmem [shape: f32[8,128], index: 9, kind: output, shape index: {}]  }
   0x1   :  { %583 = vmatprep.subr.bf16.mxu0 %v665_v0  ;;  %v33_v1 = vld [vmem:[%s919_s1] sm:$0xff]  ;;  %v34_v2 = vld [vmem:[%s919_s1 + $0x8] sm:$0xff]  ;;  %475 = vmatprep.mubr.msk.f32.mxu0 %vm666_vm0, %v667_v3  ;;  %v119_v7 = vld [vmem:[%s920_s3 + $0x10] sm:$0xff] }
   0x2   :  { %v584_v4 = vpack.c.bf16 %v34_v2, %v33_v1  ;;  %586 = vmatprep.subr.bf16.mxu1 %v665_v0  ;;  %v117_v5 = vld [vmem:[%s920_s3] sm:$0xff]  ;;  %v118_v6 = vld [vmem:[%s920_s3 + $0x8] sm:$0xff]  ;;  %510 = vmatprep.mubr.msk.f32.mxu1 %vm666_vm0, %v667_v3  ;;  %v120_v9 = vld [vmem:[%s920_s3 + $0x18] sm:$0xff] }
   0x3   :  { %v587_v8 = vpack.c.bf16 %v118_v6, %v117_v5  ;;  %v32_v10 = vld [vmem:[%s921_s0] sm:$0xff]  ;;  %v590_v11 = vpack.c.bf16 %v120_v9, %v119_v7  ;;  %v122_v13 = vld [vmem:[%s920_s3 + $0x28] sm:$0xff]  ;;  %v123_v15 = vld [vmem:[%s920_s3 + $0x30] sm:$0xff] }
   0x4   :  { %585 = vmatpush3.bf16.msra.mxu0 %v584_v4  ;;  %v121_v12 = vld [vmem:[%s920_s3 + $0x20] sm:$0xff]  ;;  %v124_v16 = vld [vmem:[%s920_s3 + $0x38] sm:$0xff]  ;;  %v126_v19 = vld [vmem:[%s920_s3 + $0x48] sm:$0xff] }
   0x5   :  { %588 = vmatpush3.bf16.msra.mxu1 %v587_v8  ;;  %610 = vmatprep.subr.bf16.mxu0 %v665_v0  ;;  %v593_v14 = vpack.c.bf16 %v122_v13, %v121_v12  ;;  %v596_v17 = vpack.c.bf16 %v124_v16, %v123_v15  ;;  %v125_v18 = vld [vmem:[%s920_s3 + $0x40] sm:$0xff]  ;;  %v127_v21 = vld [vmem:[%s920_s3 + $0x50] sm:$0xff]  ;;  %v128_v22 = vld [vmem:[%s920_s3 + $0x58] sm:$0xff] }
   0x6   :  { %589 = vmatprep.subr.bf16.mxu1 %v665_v0  ;;  %v599_v20 = vpack.c.bf16 %v126_v19, %v125_v18  ;;  %v602_v23 = vpack.c.bf16 %v128_v22, %v127_v21  ;;  %v129_v24 = vld [vmem:[%s920_s3 + $0x60] sm:$0xff]  ;;  %v130_v25 = vld [vmem:[%s920_s3 + $0x68] sm:$0xff]  ;;  %v131_v27 = vld [vmem:[%s920_s3 + $0x70] sm:$0xff] }
   0x7   :  { %476 = vmatmul.mubr.msk.f32.vlgmr.msra.gmra.mrb[0].mxu0 %vm42_vm1, %v32_v10  ;;  %v605_v26 = vpack.c.bf16 %v130_v25, %v129_v24  ;;  %v132_v28 = vld [vmem:[%s920_s3 + $0x78] sm:$0xff]  ;;  %v211_v30 = vld [vmem:[%s922_s5] sm:$0xff]  ;;  %v212_v31 = vld [vmem:[%s922_s5 + $0x8] sm:$0xff] }
   0x8   :  { %545 = vmatprep.mubr.msk.f32.mxu0 %vm666_vm0, %v667_v3  ;;  %v608_v29 = vpack.c.bf16 %v132_v28, %v131_v27  ;;  %v213_v32 = vld [vmem:[%s922_s5 + $0x10] sm:$0xff]  ;;  %v611_v33 = vpack.c.bf16 %v212_v31, %v211_v30  ;;  %v214_v34 = vld [vmem:[%s922_s5 + $0x18] sm:$0xff]  ;;  %v215_v36 = vld [vmem:[%s922_s5 + $0x20] sm:$0xff] }
   0x9   :  { %591 = vmatpush3.bf16.msra.mxu1 %v590_v11  ;;  %v614_v35 = vpack.c.bf16 %v214_v34, %v213_v32  ;;  %v216_v37 = vld [vmem:[%s922_s5 + $0x28] sm:$0xff]  ;;  %v217_v39 = vld [vmem:[%s922_s5 + $0x30] sm:$0xff]  ;;  %v218_v40 = vld [vmem:[%s922_s5 + $0x38] sm:$0xff] }
   0xa   :  { %592 = vmatprep.subr.bf16.mxu1 %v665_v0  ;;  %612 = vmatpush3.bf16.msra.mxu0 %v611_v33  ;;  %v617_v38 = vpack.c.bf16 %v216_v37, %v215_v36  ;;  %v620_v41 = vpack.c.bf16 %v218_v40, %v217_v39  ;;  %v219_v42 = vld [vmem:[%s922_s5 + $0x40] sm:$0xff]  ;;  %v220_v43 = vld [vmem:[%s922_s5 + $0x48] sm:$0xff]  ;;  %v221_v45 = vld [vmem:[%s922_s5 + $0x50] sm:$0xff] }
   0xb   :  { %613 = vmatprep.subr.bf16.mxu0 %v665_v0  ;;  %v623_v44 = vpack.c.bf16 %v220_v43, %v219_v42  ;;  %v222_v46 = vld [vmem:[%s922_s5 + $0x58] sm:$0xff]  ;;  %v223_v48 = vld [vmem:[%s922_s5 + $0x60] sm:$0xff]  ;;  %v224_v49 = vld [vmem:[%s922_s5 + $0x68] sm:$0xff] }
   0xc   :  { %v626_v47 = vpack.c.bf16 %v222_v46, %v221_v45  ;;  %v629_v50 = vpack.c.bf16 %v224_v49, %v223_v48  ;;  %v412_v51 = vld [vmem:[%s923_s2] ss:$0 sm:$0xff]  ;;  %v225_v56 = vld [vmem:[%s922_s5 + $0x70] sm:$0xff]  ;;  %v226_v57 = vld [vmem:[%s922_s5 + $0x78] sm:$0xff] }
   0xd   :  { %594 = vmatpush3.bf16.msra.mxu1 %v593_v14  ;;  %v632_v58 = vpack.c.bf16 %v226_v57, %v225_v56  ;;  %v305_v59 = vld [vmem:[%s924_s7] sm:$0xff]  ;;  %v306_v60 = vld [vmem:[%s924_s7 + $0x8] sm:$0xff]  ;;  %v307_v61 = vld [vmem:[%s924_s7 + $0x10] sm:$0xff] }
   0xe   :  { %595 = vmatprep.subr.bf16.mxu1 %v665_v0  ;;  %615 = vmatpush3.bf16.msra.mxu0 %v614_v35  ;;  %v635_v62 = vpack.c.bf16 %v306_v60, %v305_v59  ;;  %v308_v63 = vld [vmem:[%s924_s7 + $0x18] sm:$0xff]  ;;  %v309_v2 = vld [vmem:[%s924_s7 + $0x20] sm:$0xff]  ;;  %v311_v5 = vld [vmem:[%s924_s7 + $0x30] sm:$0xff] }
   0xf   :  { %616 = vmatprep.subr.bf16.mxu0 %v665_v0  ;;  %v638_v1 = vpack.c.bf16 %v308_v63, %v307_v61  ;;  %v312_v6 = vld [vmem:[%s924_s7 + $0x38] sm:$0xff]  ;;  %v313_v8 = vld [vmem:[%s924_s7 + $0x40] sm:$0xff]  ;;  %v314_v9 = vld [vmem:[%s924_s7 + $0x48] sm:$0xff] }
  0x10   :  { %v644_v7 = vpack.c.bf16 %v312_v6, %v311_v5  ;;  %v647_v10 = vpack.c.bf16 %v314_v9, %v313_v8  ;;  %v315_v11 = vld [vmem:[%s924_s7 + $0x50] sm:$0xff]  ;;  %v316_v12 = vld [vmem:[%s924_s7 + $0x58] sm:$0xff]  ;;  %v317_v14 = vld [vmem:[%s924_s7 + $0x60] sm:$0xff] }
  0x11   :  { %597 = vmatpush3.bf16.msra.mxu1 %v596_v17  ;;  %v650_v13 = vpack.c.bf16 %v316_v12, %v315_v11  ;;  %v318_v15 = vld [vmem:[%s924_s7 + $0x68] sm:$0xff]  ;;  %v414_v17 = vld [vmem:[%s925_s4] ss:$0 sm:$0xff]  ;;  %v319_v22 = vld [vmem:[%s924_s7 + $0x70] sm:$0xff] }
  0x12   :  { %598 = vmatprep.subr.bf16.mxu1 %v665_v0  ;;  %618 = vmatpush3.bf16.msra.mxu0 %v617_v38  ;;  %v653_v16 = vpack.c.bf16 %v318_v15, %v317_v14 }
  0x13   :  { %619 = vmatprep.subr.bf16.mxu0 %v665_v0 }
  0x15   :  { %600 = vmatpush3.bf16.msra.mxu1 %v599_v20 }
  0x16   :  { %601 = vmatprep.subr.bf16.mxu1 %v665_v0  ;;  %621 = vmatpush3.bf16.msra.mxu0 %v620_v41 }
  0x17   :  { %622 = vmatprep.subr.bf16.mxu0 %v665_v0 }
  0x19   :  { %603 = vmatpush3.bf16.msra.mxu1 %v602_v23  ;;  %v320_v23 = vld [vmem:[%s924_s7 + $0x78] sm:$0xff] }
  0x1a   :  { %604 = vmatprep.subr.bf16.mxu1 %v665_v0  ;;  %624 = vmatpush3.bf16.msra.mxu0 %v623_v44  ;;  %v656_v24 = vpack.c.bf16 %v320_v23, %v319_v22 }
  0x1b   :  { %625 = vmatprep.subr.bf16.mxu0 %v665_v0 }
  0x1d   :  { %606 = vmatpush3.bf16.msra.mxu1 %v605_v26 }
  0x1e   :  { %607 = vmatprep.subr.bf16.mxu1 %v665_v0  ;;  %627 = vmatpush3.bf16.msra.mxu0 %v626_v47 }
  0x1f   :  { %628 = vmatprep.subr.bf16.mxu0 %v665_v0 }
  0x21   :  { %609 = vmatpush3.bf16.msra.mxu1 %v608_v29  ;;  %v416_v29 = vld [vmem:[%s927_s8] ss:$0 sm:$0xff] }
  0x22   :  { %634 = vmatprep.subr.bf16.mxu1 %v665_v0  ;;  %630 = vmatpush3.bf16.msra.mxu0 %v629_v50 }
  0x23   :  { %631 = vmatprep.subr.bf16.mxu0 %v665_v0 }
  0x26   :  { %633 = vmatpush3.bf16.msra.mxu0 %v632_v58 }
  0xda   :  { %v112_v52 = vpop.f32.mrb[0].mxu0 }
  0xdb   :  { %v113_v53 = vadd.f32 %v412_v51, %v112_v52  ;;  %v477_v54 = vpop.f32.mrb[1].mxu0 }
  0xdd   :  { %v116_v55 = vmax.f32 %v113_v53, 0.0 }
  0xdf   :  { %511 = vmatmul.mubr.f32.vlgmr.msra.gmra.mrb[0].mxu1 %v116_v55 }
  0xe0   :  { %580 = vmatprep.mubr.msk.f32.mxu1 %vm666_vm0, %v667_v3  ;;  %636 = vmatpush3.bf16.msra.mxu1 %v635_v62  ;;  %v310_v3 = vld [vmem:[%s924_s7 + $0x28] sm:$0xff] }
  0xe1   :  { %637 = vmatprep.subr.bf16.mxu1 %v665_v0  ;;  %v641_v4 = vpack.c.bf16 %v310_v3, %v309_v2 }
  0xe4   :  { %639 = vmatpush3.bf16.msra.mxu1 %v638_v1 }
  0xe5   :  { %640 = vmatprep.subr.bf16.mxu1 %v665_v0 }
  0xe8   :  { %642 = vmatpush3.bf16.msra.mxu1 %v641_v4 }
  0xe9   :  { %643 = vmatprep.subr.bf16.mxu1 %v665_v0 }
  0xec   :  { %645 = vmatpush3.bf16.msra.mxu1 %v644_v7 }
  0xed   :  { %646 = vmatprep.subr.bf16.mxu1 %v665_v0 }
  0xf0   :  { %648 = vmatpush3.bf16.msra.mxu1 %v647_v10 }
  0xf1   :  { %649 = vmatprep.subr.bf16.mxu1 %v665_v0 }
  0xf4   :  { %651 = vmatpush3.bf16.msra.mxu1 %v650_v13 }
  0xf5   :  { %652 = vmatprep.subr.bf16.mxu1 %v665_v0 }
  0xf8   :  { %654 = vmatpush3.bf16.msra.mxu1 %v653_v16 }
  0xf9   :  { %655 = vmatprep.subr.bf16.mxu1 %v665_v0  ;;  %v415_v0 = vld [vmem:[%s926_s6] ss:$0 sm:$0xff] }
  0xfc   :  { %657 = vmatpush3.bf16.msra.mxu1 %v656_v24 }
 0x1b2   :  { %v206_v18 = vpop.f32.mrb[0].mxu1 }
 0x1b3   :  { %v207_v19 = vadd.f32 %v414_v17, %v206_v18  ;;  %v512_v20 = vpop.f32.mrb[1].mxu1 }
 0x1b5   :  { %v210_v21 = vmax.f32 %v207_v19, 0.0 }
 0x1b7   :  { %546 = vmatmul.mubr.f32.vlgmr.msra.gmra.mrb[2].mxu0 %v210_v21 }
 0x28a   :  { %v300_v25 = vpop.f32.mrb[2].mxu0 }
 0x28b   :  { %v301_v26 = vadd.f32 %v415_v0, %v300_v25  ;;  %v547_v27 = vpop.f32.mrb[3].mxu0 }
 0x28d   :  { %v304_v28 = vmax.f32 %v301_v26, 0.0 }
 0x28f   :  { %581 = vmatmul.mubr.f32.vlgmr.msra.gmra.mrb[2].mxu1 %v304_v28 }
 0x362   :  { %v394_v30 = vpop.f32.mrb[2].mxu1 }
 0x363   :  { %v395_v31 = vadd.f32 %v416_v29, %v394_v30  ;;  %v582_v32 = vpop.f32.mrb[3].mxu1 }
 0x365   :  { %398 = vmax.xlane.f32.xlu0 %v395_v31 }
 0x3f2   :  { %v399_v33 = vpop.xlane.xlu0 %398 }
 0x3f3   :  { %v400_v34 = vsub.f32 %v395_v31, %v399_v33 }
 0x3f5   :  { %v401_v35 = vmul.f32 1.442695, %v400_v34 }
 0x3f7   :  { %661 = vpow2.f32 %v401_v35 }
 0x401   :  { %v662_v36 = vpop.eup %661 }
 0x402   :  { %403 = vadd.xlane.f32.xlu0 %v662_v36 }
 0x48f   :  { %v404_v37 = vpop.xlane.xlu0 %403 }
 0x490   :  { %663 = vrcp.f32 %v404_v37 }
 0x49a   :  { %v664_v38 = vpop.eup %663 }
 0x49b   :  { %v406_v39 = vmul.f32 %v664_v38, %v662_v36 }
 0x49d   :  { %407 = vst [vmem:[%s928_s9] sm:$0xff] %v406_v39 }

</bundles_post_ra>
